<compile_context>
chip_gen: v7x
topology: tpu7x:2x2x1
jax: 0.10.0
libtpu: 0.0.40
codegen_flags: <defaults>
</compile_context>

<pallas_src>
from functools import partial

import numpy as np
import jax
import jax.numpy as jnp
from jax.experimental import pallas as pl
from jax.experimental.pallas import tpu as pltpu

# ---- model hyper-parameters (cfg) -------------------------------------------
D_MODEL = 32          # cfg.dim_model
D_FFN = 64            # cfg.dim_ffn
VOCAB = 128           # cfg.vocab_size
MAX_SPAN = 10         # max_span_length
LN_EPS = 1e-5         # torch.nn.LayerNorm default eps


def _round_up(x, m):
    return ((x + m - 1) // m) * m


def _choose_tiling(n_rows, tm_max=4096, split_threshold=2048):
    """Pick (tile_rows, grid, padded_rows).

    Small inputs: a single full-extent tile (block == array, so the (8,128) divisibility
    constraint does not bind).  Large inputs: an EVEN number of tiles of <= tm_max rows
    (multiple of 16 for bf16 sublane packing) so the single "parallel" grid axis shards
    across both TensorCores on v7x and per-step pipeline overhead is amortized.
    """
    n8 = max(8, _round_up(n_rows, 8))
    if n8 < split_threshold:
        return n8, 1, n8
    grid = max(2, -(-n8 // tm_max))
    if grid % 2:
        grid += 1
    tm = _round_up(-(-n8 // grid), 16)
    return tm, grid, tm * grid


# ---- in-kernel math helpers (f32) --------------------------------------------
def _gelu(x):
    # exact (erf-based) GELU, matching torch.nn.GELU() default
    return 0.5 * x * (1.0 + jax.lax.erf(x * 0.7071067811865476))


def _layernorm(x, gamma, beta):
    mu = jnp.mean(x, axis=-1, keepdims=True)
    var = jnp.mean(jnp.square(x - mu), axis=-1, keepdims=True)
    return (x - mu) * jax.lax.rsqrt(var + LN_EPS) * gamma + beta


# ---- Pallas kernel -----------------------------------------------------------
def sbo_kernel(xa_ref,                      # (tm, 4*D)  bf16   [x_masked | repl]
               wa_ref,                      # (4*D, 3*D) bf16   [[Wp], [I_{3D}]]
               w1_ref, p1_ref,              # (3*D, FFN) bf16, (3, FFN) f32 [b1; g1; beta1]
               w2_ref, p2_ref,              # (FFN, D)   bf16, (2, D)   f32 [g2; beta2]
               wc_ref, bc_ref,              # (D, VOCAB) bf16, (1, VOCAB) f32
               out_ref):                    # (tm, VOCAB) bf16
    # hoist the small parameter rows once (packed buffers)
    b1 = p1_ref[0:1, :]
    g1 = p1_ref[1:2, :]
    be1 = p1_ref[2:3, :]
    g2 = p2_ref[0:1, :]
    be2 = p2_ref[1:2, :]

    # projector + span-boundary replacement in one lane-dense 128-wide MXU pass:
    # the identity block of W_aug passes the bf16 repl rows through exactly (f32 acc),
    # and span rows of the x half are pre-zeroed, so this equals where(keep, x@Wp, repl).
    h_t = jnp.dot(xa_ref[...], wa_ref[...],
                  preferred_element_type=jnp.float32)                     # (tm, 3D) f32

    # head[0..2]: Linear(3*dim, ffn) + GELU + LayerNorm(ffn)
    a = jnp.dot(h_t.astype(jnp.bfloat16), w1_ref[...],
                preferred_element_type=jnp.float32) + b1
    a = _layernorm(_gelu(a), g1, be1)

    # head[3..5]: Linear(ffn, dim, bias=False) + GELU + LayerNorm(dim)
    z = jnp.dot(a.astype(jnp.bfloat16), w2_ref[...],
                preferred_element_type=jnp.float32)
    z = _layernorm(_gelu(z), g2, be2)

    # classifier: Linear(dim, vocab) with attached (trainable, zero-init) bias parameter.
    # bc is kept for semantic fidelity; drop the term + stream if it is never trained.
    logits = jnp.dot(z.astype(jnp.bfloat16), wc_ref[...],
                     preferred_element_type=jnp.float32) + bc_ref[...]
    out_ref[...] = logits.astype(out_ref.dtype)                           # bf16 store


# ---- host glue: span detection + tiny per-token index tables -----------------
def find_consecutive_groups(mask_labels, target_value=1):
    all_groups = []
    for mask_label in mask_labels:
        groups, cur = [], None
        for i, v in enumerate(mask_label):
            if v == target_value:
                if cur is None:
                    cur = {"start": i, "end": i}
                else:
                    cur["end"] = i
            elif cur is not None:
                groups.append(cur)
                cur = None
        if cur is not None:
            groups.append(cur)
        all_groups.append(groups)
    return all_groups


def build_span_tables(mask_labels):
    """Per-token span tables built on host from mask_labels only (no hidden_states
    round trip).  For each token: span flag, index of x_{s-1}, index of x_{e+1}, and
    position k within its span (index into span_pos_emb)."""
    ml = np.asarray(mask_labels)
    B, S = ml.shape
    span_flag = np.zeros((B, S), np.float32)
    prev_idx = np.zeros((B, S), np.int32)
    next_idx = np.zeros((B, S), np.int32)
    pos_idx = np.zeros((B, S), np.int32)
    for i, batch in enumerate(find_consecutive_groups(ml)):
        for span in batch:
            s, e = span["start"], span["end"]
            L = e - s + 1
            span_flag[i, s:e + 1] = 1.0
            # NOTE: same boundary hazard as the PyTorch reference (s-1 wraps, e+1 may go
            # past the sequence end; JAX gather clamps OOB). Spans are assumed to stay
            # away from sequence edges, as in the reference.
            prev_idx[i, s:e + 1] = s - 1
            next_idx[i, s:e + 1] = e + 1
            pos_idx[i, s:e + 1] = np.arange(L)
    return span_flag, prev_idx, next_idx, pos_idx


# ---- parameter packing (done once, not per call) -----------------------------
def pack_params(params):
    # W_aug = [[Wp], [I_{3D}]] so that [x | repl] @ W_aug == x @ Wp + repl
    w_aug = jnp.concatenate(
        [params["Wp"], jnp.eye(3 * D_MODEL, dtype=jnp.float32)], axis=0)
    return {
        "W_aug": w_aug.astype(jnp.bfloat16),
        "W1": params["W1"].astype(jnp.bfloat16),
        "W2": params["W2"].astype(jnp.bfloat16),
        "Wc": params["Wc"].astype(jnp.bfloat16),
        # packed small vectors (kept f32): [b1; g1; beta1], [g2; beta2]
        "p1": jnp.concatenate([params["b1"], params["g1"], params["beta1"]], axis=0),
        "p2": jnp.concatenate([params["g2"], params["beta2"]], axis=0),
        "bc": params["bc"],
        "pos_emb": params["pos_emb"],
    }


# ---- device-side forward (jit'd once per shape signature) ---------------------
@partial(jax.jit, static_argnames=("tm", "grid", "n_pad"))
def _sbo_device(hidden_states, span_flag, prev_idx, next_idx, pos_idx,
                w_aug, w1, p1, w2, p2, wc, bc, pos_emb,
                *, tm, grid, n_pad):
    B, S, D = hidden_states.shape
    N = B * S

    # ---- on-device assembly of [x_masked | repl] (no host round trip) --------
    # TODO(synk): the boundary-row gather could move fully in-kernel via scalar-prefetched
    # span tables + manual DMA; kept as fused jnp preprocessing here (gets fused by XLA).
    flag = span_flag[..., None]                                        # (B,S,1) f32
    batch_ix = jnp.arange(B, dtype=jnp.int32)[:, None]                 # (B,1)
    ctx_s = hidden_states[batch_ix, prev_idx]                          # (B,S,D)
    ctx_e = hidden_states[batch_ix, next_idx]                          # (B,S,D)
    p_emb = pos_emb[pos_idx]                                           # (B,S,D)
    repl = jnp.concatenate([ctx_s, p_emb, ctx_e], axis=-1) * flag      # zero outside spans
    x_masked = hidden_states * (1.0 - flag)                            # span rows zeroed
    x_aug = jnp.concatenate([x_masked, repl], axis=-1)                 # (B,S,4*D)
    x_aug = x_aug.astype(jnp.bfloat16).reshape(N, 4 * D)

    pad = n_pad - N
    if pad:
        x_aug = jnp.pad(x_aug, ((0, pad), (0, 0)))

    # ---- VMEM budget: only raise the scoped limit when we actually need it ----
    per_row_bytes = (2 * (4 * D_MODEL) * 2          # x_aug bf16, double-buffered
                     + 2 * VOCAB * 2                # bf16 output, double-buffered
                     + 4 * (3 * D_MODEL + D_FFN + D_MODEL + VOCAB))   # f32 intermediates
    vmem_est = tm * per_row_bytes + (1 << 20)       # + ~1 MiB weights/params
    cp_kwargs = dict(dimension_semantics=("parallel",))
    if vmem_est > 24 * 1024 * 1024:
        cp_kwargs["vmem_limit_bytes"] = min(int(1.5 * vmem_est), 100 * 1024 * 1024)

    rows = lambda i: (i, 0)
    full = lambda i: (0, 0)

    out = pl.pallas_call(
        sbo_kernel,
        out_shape=jax.ShapeDtypeStruct((n_pad, VOCAB), jnp.bfloat16),
        grid_spec=pltpu.PrefetchScalarGridSpec(
            num_scalar_prefetch=0,
            grid=(grid,),
            in_specs=[
                pl.BlockSpec((tm, 4 * D_MODEL), rows),        # [x_masked | repl] (bf16)
                pl.BlockSpec((4 * D_MODEL, 3 * D_MODEL), full),  # W_aug (bf16)
                pl.BlockSpec((3 * D_MODEL, D_FFN), full),     # W1 (bf16)
                pl.BlockSpec((3, D_FFN), full),               # packed [b1; g1; beta1] (f32)
                pl.BlockSpec((D_FFN, D_MODEL), full),         # W2 (bf16)
                pl.BlockSpec((2, D_MODEL), full),             # packed [g2; beta2] (f32)
                pl.BlockSpec((D_MODEL, VOCAB), full),         # Wc (bf16)
                pl.BlockSpec((1, VOCAB), full),               # bc (f32)
            ],
            out_specs=pl.BlockSpec((tm, VOCAB), rows),
        ),
        compiler_params=pltpu.CompilerParams(**cp_kwargs),
    )(x_aug, w_aug, w1, p1, w2, p2, wc, bc)

    return out[:N].reshape(B, S, VOCAB)


# ---- wrapper -----------------------------------------------------------------
def sbo_head_forward(hidden_states, mask_labels, packed, tm_max=4096):
    B, S, _ = hidden_states.shape
    N = B * S
    tm, grid, n_pad = _choose_tiling(N, tm_max=tm_max)

    span_flag, prev_idx, next_idx, pos_idx = build_span_tables(mask_labels)

    return _sbo_device(
        jnp.asarray(hidden_states),
        jnp.asarray(span_flag), jnp.asarray(prev_idx),
        jnp.asarray(next_idx), jnp.asarray(pos_idx),
        packed["W_aug"], packed["W1"], packed["p1"],
        packed["W2"], packed["p2"], packed["Wc"], packed["bc"],
        packed["pos_emb"],
        tm=tm, grid=grid, n_pad=n_pad)


# ---- pure-JAX f32 reference (independent of the kernel's fused path) ---------
def build_span_replacement_np(hidden_states_np, mask_labels, pos_emb_np):
    B, S, D = hidden_states_np.shape
    repl = np.zeros((B, S, 3 * D), np.float32)
    keep = np.ones((B, S, 1), np.float32)
    for i, batch in enumerate(find_consecutive_groups(np.asarray(mask_labels))):
        for span in batch:
            s, e = span["start"], span["end"]
            L = e - s + 1
            ctx_s = hidden_states_np[i, s - 1, :]
            ctx_e = hidden_states_np[i, e + 1, :]
            rows = np.concatenate(
                [np.broadcast_to(ctx_s, (L, D)),
                 pos_emb_np[:L],
                 np.broadcast_to(ctx_e, (L, D))], axis=1)
            repl[i, s:s + L, :] = rows
            keep[i, s:s + L, 0] = 0.0
    return repl, keep


def sbo_head_reference(hidden_states, mask_labels, params):
    hs_np = np.asarray(hidden_states)
    repl, keep = build_span_replacement_np(hs_np, mask_labels, np.asarray(params["pos_emb"]))
    h = hidden_states @ params["Wp"]
    h_t = jnp.where(jnp.asarray(keep) > 0, h, jnp.asarray(repl))
    a = h_t @ params["W1"] + params["b1"]
    a = _layernorm(_gelu(a), params["g1"], params["beta1"])
    z = a @ params["W2"]
    z = _layernorm(_gelu(z), params["g2"], params["beta2"])
    return z @ params["Wc"] + params["bc"]


# ---- parameter init (deterministic, synthetic) -------------------------------
def init_params(key):
    ks = jax.random.split(key, 6)
    scale = 0.02
    return {
        "Wp": scale * jax.random.normal(ks[0], (D_MODEL, 3 * D_MODEL), jnp.float32),
        # table sized (MAX_SPAN*3, D) to mirror nn.Embedding(max_span_length*3, dim);
        # only rows [0, span_len) are used per span.
        "pos_emb": scale * jax.random.normal(ks[1], (MAX_SPAN * 3, D_MODEL), jnp.float32),
        "W1": scale * jax.random.normal(ks[2], (3 * D_MODEL, D_FFN), jnp.float32),
        "b1": scale * jax.random.normal(ks[3], (1, D_FFN), jnp.float32),
        "g1": jnp.ones((1, D_FFN), jnp.float32),
        "beta1": jnp.zeros((1, D_FFN), jnp.float32),
        "W2": scale * jax.random.normal(ks[4], (D_FFN, D_MODEL), jnp.float32),
        "g2": jnp.ones((1, D_MODEL), jnp.float32),
        "beta2": jnp.zeros((1, D_MODEL), jnp.float32),
        "Wc": scale * jax.random.normal(ks[5], (D_MODEL, VOCAB), jnp.float32),
        "bc": jnp.zeros((1, VOCAB), jnp.float32),   # nn.Parameter(torch.zeros(vocab))
    }


if __name__ == "__main__":
    key = jax.random.PRNGKey(0)
    k_x, k_p = jax.random.split(key)

    B, S = 2, 16
    hidden_states = jax.random.normal(k_x, (B, S, D_MODEL), jnp.float32)

    # deterministic mask spans (kept away from sequence boundaries, since the
    # reference indexes hidden_states[:, start-1] and [:, end+1])
    mask_labels = np.zeros((B, S), np.int32)
    mask_labels[0, 3:6] = 1    # span of length 3
    mask_labels[0, 10] = 1     # span of length 1
    mask_labels[1, 7:9] = 1    # span of length 2

    params = init_params(k_p)
    packed = pack_params(params)

    logits = sbo_head_forward(hidden_states, mask_labels, packed)
    logits = jax.block_until_ready(logits)

    ref = jax.block_until_ready(sbo_head_reference(hidden_states, mask_labels, params))
    # bf16 MXU operands + bf16 output vs f32 reference -> loosened tolerance
    np.testing.assert_allclose(np.asarray(logits.astype(jnp.float32)),
                               np.asarray(ref), rtol=3e-2, atol=3e-2)

    print("KERNEL_OK")
</pallas_src>

<mosaic_0001>
module attributes {stable_mosaic.version = 11 : i64} {
  func.func @sbo_kernel(%arg0: i32, %arg1: memref<32x128xbf16, #tpu.memory_space<vmem>>, %arg2: memref<128x96xbf16, #tpu.memory_space<vmem>>, %arg3: memref<96x64xbf16, #tpu.memory_space<vmem>>, %arg4: memref<3x64xf32, #tpu.memory_space<vmem>>, %arg5: memref<64x32xbf16, #tpu.memory_space<vmem>>, %arg6: memref<2x32xf32, #tpu.memory_space<vmem>>, %arg7: memref<32x128xbf16, #tpu.memory_space<vmem>>, %arg8: memref<1x128xf32, #tpu.memory_space<vmem>>, %arg9: memref<32x128xbf16, #tpu.memory_space<vmem>>) attributes {dimension_semantics = [#tpu.dimension_semantics<parallel>], iteration_bounds = array<i64: 1>, scalar_prefetch = 0 : i64, scratch_operands = 0 : i64, tpu.core_type = #tpu.core_type<tc>, window_params = [{transform_indices = @transform_0, window_bounds = array<i64: 32, 128>}, {pipeline_mode = #tpu.pipeline_mode<synchronous>, transform_indices = @transform_1, window_bounds = array<i64: 128, 96>}, {pipeline_mode = #tpu.pipeline_mode<synchronous>, transform_indices = @transform_2, window_bounds = array<i64: 96, 64>}, {pipeline_mode = #tpu.pipeline_mode<synchronous>, transform_indices = @transform_3, window_bounds = array<i64: 3, 64>}, {pipeline_mode = #tpu.pipeline_mode<synchronous>, transform_indices = @transform_4, window_bounds = array<i64: 64, 32>}, {pipeline_mode = #tpu.pipeline_mode<synchronous>, transform_indices = @transform_5, window_bounds = array<i64: 2, 32>}, {pipeline_mode = #tpu.pipeline_mode<synchronous>, transform_indices = @transform_6, window_bounds = array<i64: 32, 128>}, {pipeline_mode = #tpu.pipeline_mode<synchronous>, transform_indices = @transform_7, window_bounds = array<i64: 1, 128>}, {transform_indices = @transform_8, window_bounds = array<i64: 32, 128>}]} {
    %c0 = arith.constant 0 : index
    %c0_0 = arith.constant 0 : index
    %0 = vector.load %arg4[%c0, %c0_0] : memref<3x64xf32, #tpu.memory_space<vmem>>, vector<1x64xf32>
    %c1 = arith.constant 1 : index
    %c0_1 = arith.constant 0 : index
    %1 = vector.load %arg4[%c1, %c0_1] : memref<3x64xf32, #tpu.memory_space<vmem>>, vector<1x64xf32>
    %c2 = arith.constant 2 : index
    %c0_2 = arith.constant 0 : index
    %2 = vector.load %arg4[%c2, %c0_2] : memref<3x64xf32, #tpu.memory_space<vmem>>, vector<1x64xf32>
    %c0_3 = arith.constant 0 : index
    %c0_4 = arith.constant 0 : index
    %3 = vector.load %arg6[%c0_3, %c0_4] : memref<2x32xf32, #tpu.memory_space<vmem>>, vector<1x32xf32>
    %c1_5 = arith.constant 1 : index
    %c0_6 = arith.constant 0 : index
    %4 = vector.load %arg6[%c1_5, %c0_6] : memref<2x32xf32, #tpu.memory_space<vmem>>, vector<1x32xf32>
    %c0_7 = arith.constant 0 : index
    %c0_8 = arith.constant 0 : index
    %5 = vector.load %arg1[%c0_7, %c0_8] : memref<32x128xbf16, #tpu.memory_space<vmem>>, vector<32x128xbf16>
    %c0_9 = arith.constant 0 : index
    %c0_10 = arith.constant 0 : index
    %6 = vector.load %arg2[%c0_9, %c0_10] : memref<128x96xbf16, #tpu.memory_space<vmem>>, vector<128x96xbf16>
    %cst = arith.constant dense<0.000000e+00> : vector<32x96xf32>
    %7 = tpu.matmul %5, %6, %cst {dimension_numbers = #tpu.dot_dimension_numbers<[1], [0], [0], [1], [0, 0, 1, 1], [], []>} : vector<32x128xbf16>, vector<128x96xbf16>, vector<32x96xf32> -> vector<32x96xf32>
    %8 = arith.truncf %7 : vector<32x96xf32> to vector<32x96xbf16>
    %c0_11 = arith.constant 0 : index
    %c0_12 = arith.constant 0 : index
    %9 = vector.load %arg3[%c0_11, %c0_12] : memref<96x64xbf16, #tpu.memory_space<vmem>>, vector<96x64xbf16>
    %cst_13 = arith.constant dense<0.000000e+00> : vector<32x64xf32>
    %10 = tpu.matmul %8, %9, %cst_13 {dimension_numbers = #tpu.dot_dimension_numbers<[1], [0], [0], [1], [0, 0, 1, 1], [], []>} : vector<32x96xbf16>, vector<96x64xbf16>, vector<32x64xf32> -> vector<32x64xf32>
    %11 = vector.broadcast %0 : vector<1x64xf32> to vector<32x64xf32>
    %12 = arith.addf %10, %11 : vector<32x64xf32>
    %cst_14 = arith.constant 5.000000e-01 : f32
    %13 = vector.broadcast %cst_14 : f32 to vector<32x64xf32>
    %14 = arith.mulf %13, %12 : vector<32x64xf32>
    %cst_15 = arith.constant 0.707106769 : f32
    %15 = vector.broadcast %cst_15 : f32 to vector<32x64xf32>
    %16 = arith.mulf %12, %15 : vector<32x64xf32>
    %17 = math.erf %16 : vector<32x64xf32>
    %cst_16 = arith.constant 1.000000e+00 : f32
    %18 = vector.broadcast %cst_16 : f32 to vector<32x64xf32>
    %19 = arith.addf %18, %17 : vector<32x64xf32>
    %20 = arith.mulf %14, %19 : vector<32x64xf32>
    %cst_17 = arith.constant dense<0.000000e+00> : vector<32xf32>
    %21 = vector.multi_reduction <add>, %20, %cst_17 [1] : vector<32x64xf32> to vector<32xf32>
    %22 = vector.shape_cast %21 : vector<32xf32> to vector<32x1xf32>
    %cst_18 = arith.constant 6.400000e+01 : f32
    %23 = vector.broadcast %cst_18 : f32 to vector<32x1xf32>
    %24 = arith.divf %22, %23 : vector<32x1xf32>
    %25 = vector.broadcast %24 : vector<32x1xf32> to vector<32x64xf32>
    %26 = arith.subf %20, %25 : vector<32x64xf32>
    %27 = arith.mulf %26, %26 : vector<32x64xf32>
    %cst_19 = arith.constant dense<0.000000e+00> : vector<32xf32>
    %28 = vector.multi_reduction <add>, %27, %cst_19 [1] : vector<32x64xf32> to vector<32xf32>
    %29 = vector.shape_cast %28 : vector<32xf32> to vector<32x1xf32>
    %cst_20 = arith.constant 6.400000e+01 : f32
    %30 = vector.broadcast %cst_20 : f32 to vector<32x1xf32>
    %31 = arith.divf %29, %30 : vector<32x1xf32>
    %32 = vector.broadcast %24 : vector<32x1xf32> to vector<32x64xf32>
    %33 = arith.subf %20, %32 : vector<32x64xf32>
    %cst_21 = arith.constant 9.99999974E-6 : f32
    %34 = vector.broadcast %cst_21 : f32 to vector<32x1xf32>
    %35 = arith.addf %31, %34 : vector<32x1xf32>
    %36 = math.rsqrt %35 : vector<32x1xf32>
    %37 = vector.broadcast %36 : vector<32x1xf32> to vector<32x64xf32>
    %38 = arith.mulf %33, %37 : vector<32x64xf32>
    %39 = vector.broadcast %1 : vector<1x64xf32> to vector<32x64xf32>
    %40 = arith.mulf %38, %39 : vector<32x64xf32>
    %41 = vector.broadcast %2 : vector<1x64xf32> to vector<32x64xf32>
    %42 = arith.addf %40, %41 : vector<32x64xf32>
    %43 = arith.truncf %42 : vector<32x64xf32> to vector<32x64xbf16>
    %c0_22 = arith.constant 0 : index
    %c0_23 = arith.constant 0 : index
    %44 = vector.load %arg5[%c0_22, %c0_23] : memref<64x32xbf16, #tpu.memory_space<vmem>>, vector<64x32xbf16>
    %cst_24 = arith.constant dense<0.000000e+00> : vector<32x32xf32>
    %45 = tpu.matmul %43, %44, %cst_24 {dimension_numbers = #tpu.dot_dimension_numbers<[1], [0], [0], [1], [0, 0, 1, 1], [], []>} : vector<32x64xbf16>, vector<64x32xbf16>, vector<32x32xf32> -> vector<32x32xf32>
    %cst_25 = arith.constant 5.000000e-01 : f32
    %46 = vector.broadcast %cst_25 : f32 to vector<32x32xf32>
    %47 = arith.mulf %46, %45 : vector<32x32xf32>
    %cst_26 = arith.constant 0.707106769 : f32
    %48 = vector.broadcast %cst_26 : f32 to vector<32x32xf32>
    %49 = arith.mulf %45, %48 : vector<32x32xf32>
    %50 = math.erf %49 : vector<32x32xf32>
    %cst_27 = arith.constant 1.000000e+00 : f32
    %51 = vector.broadcast %cst_27 : f32 to vector<32x32xf32>
    %52 = arith.addf %51, %50 : vector<32x32xf32>
    %53 = arith.mulf %47, %52 : vector<32x32xf32>
    %cst_28 = arith.constant dense<0.000000e+00> : vector<32xf32>
    %54 = vector.multi_reduction <add>, %53, %cst_28 [1] : vector<32x32xf32> to vector<32xf32>
    %55 = vector.shape_cast %54 : vector<32xf32> to vector<32x1xf32>
    %cst_29 = arith.constant 3.200000e+01 : f32
    %56 = vector.broadcast %cst_29 : f32 to vector<32x1xf32>
    %57 = arith.divf %55, %56 : vector<32x1xf32>
    %58 = vector.broadcast %57 : vector<32x1xf32> to vector<32x32xf32>
    %59 = arith.subf %53, %58 : vector<32x32xf32>
    %60 = arith.mulf %59, %59 : vector<32x32xf32>
    %cst_30 = arith.constant dense<0.000000e+00> : vector<32xf32>
    %61 = vector.multi_reduction <add>, %60, %cst_30 [1] : vector<32x32xf32> to vector<32xf32>
    %62 = vector.shape_cast %61 : vector<32xf32> to vector<32x1xf32>
    %cst_31 = arith.constant 3.200000e+01 : f32
    %63 = vector.broadcast %cst_31 : f32 to vector<32x1xf32>
    %64 = arith.divf %62, %63 : vector<32x1xf32>
    %65 = vector.broadcast %57 : vector<32x1xf32> to vector<32x32xf32>
    %66 = arith.subf %53, %65 : vector<32x32xf32>
    %cst_32 = arith.constant 9.99999974E-6 : f32
    %67 = vector.broadcast %cst_32 : f32 to vector<32x1xf32>
    %68 = arith.addf %64, %67 : vector<32x1xf32>
    %69 = math.rsqrt %68 : vector<32x1xf32>
    %70 = vector.broadcast %69 : vector<32x1xf32> to vector<32x32xf32>
    %71 = arith.mulf %66, %70 : vector<32x32xf32>
    %72 = vector.broadcast %3 : vector<1x32xf32> to vector<32x32xf32>
    %73 = arith.mulf %71, %72 : vector<32x32xf32>
    %74 = vector.broadcast %4 : vector<1x32xf32> to vector<32x32xf32>
    %75 = arith.addf %73, %74 : vector<32x32xf32>
    %76 = arith.truncf %75 : vector<32x32xf32> to vector<32x32xbf16>
    %c0_33 = arith.constant 0 : index
    %c0_34 = arith.constant 0 : index
    %77 = vector.load %arg7[%c0_33, %c0_34] : memref<32x128xbf16, #tpu.memory_space<vmem>>, vector<32x128xbf16>
    %cst_35 = arith.constant dense<0.000000e+00> : vector<32x128xf32>
    %78 = tpu.matmul %76, %77, %cst_35 {dimension_numbers = #tpu.dot_dimension_numbers<[1], [0], [0], [1], [0, 0, 1, 1], [], []>} : vector<32x32xbf16>, vector<32x128xbf16>, vector<32x128xf32> -> vector<32x128xf32>
    %c0_36 = arith.constant 0 : index
    %c0_37 = arith.constant 0 : index
    %79 = vector.load %arg8[%c0_36, %c0_37] : memref<1x128xf32, #tpu.memory_space<vmem>>, vector<1x128xf32>
    %80 = vector.broadcast %79 : vector<1x128xf32> to vector<32x128xf32>
    %81 = arith.addf %78, %80 : vector<32x128xf32>
    %82 = arith.truncf %81 : vector<32x128xf32> to vector<32x128xbf16>
    %c0_38 = arith.constant 0 : index
    %c0_39 = arith.constant 0 : index
    %83 = vector.load %arg9[%c0_38, %c0_39] : memref<32x128xbf16, #tpu.memory_space<vmem>>, vector<32x128xbf16>
    tpu.vector_store %arg9[%c0_38, %c0_39], %82 {strides = array<i32>} : memref<32x128xbf16, #tpu.memory_space<vmem>>, vector<32x128xbf16>,
    return
  }
  func.func @transform_0(%arg0: i32) -> (i32, i32) {
    %c0_i32 = arith.constant 0 : i32
    %c0_i32_0 = arith.constant 0 : i32
    return %arg0, %c0_i32 : i32, i32
  }
  func.func @transform_1(%arg0: i32) -> (i32, i32) {
    %c0_i32 = arith.constant 0 : i32
    %c0_i32_0 = arith.constant 0 : i32
    %c0_i32_1 = arith.constant 0 : i32
    return %c0_i32, %c0_i32_0 : i32, i32
  }
  func.func @transform_2(%arg0: i32) -> (i32, i32) {
    %c0_i32 = arith.constant 0 : i32
    %c0_i32_0 = arith.constant 0 : i32
    %c0_i32_1 = arith.constant 0 : i32
    return %c0_i32, %c0_i32_0 : i32, i32
  }
  func.func @transform_3(%arg0: i32) -> (i32, i32) {
    %c0_i32 = arith.constant 0 : i32
    %c0_i32_0 = arith.constant 0 : i32
    %c0_i32_1 = arith.constant 0 : i32
    return %c0_i32, %c0_i32_0 : i32, i32
  }
  func.func @transform_4(%arg0: i32) -> (i32, i32) {
    %c0_i32 = arith.constant 0 : i32
    %c0_i32_0 = arith.constant 0 : i32
    %c0_i32_1 = arith.constant 0 : i32
    return %c0_i32, %c0_i32_0 : i32, i32
  }
  func.func @transform_5(%arg0: i32) -> (i32, i32) {
    %c0_i32 = arith.constant 0 : i32
    %c0_i32_0 = arith.constant 0 : i32
    %c0_i32_1 = arith.constant 0 : i32
    return %c0_i32, %c0_i32_0 : i32, i32
  }
  func.func @transform_6(%arg0: i32) -> (i32, i32) {
    %c0_i32 = arith.constant 0 : i32
    %c0_i32_0 = arith.constant 0 : i32
    %c0_i32_1 = arith.constant 0 : i32
    return %c0_i32, %c0_i32_0 : i32, i32
  }
  func.func @transform_7(%arg0: i32) -> (i32, i32) {
    %c0_i32 = arith.constant 0 : i32
    %c0_i32_0 = arith.constant 0 : i32
    %c0_i32_1 = arith.constant 0 : i32
    return %c0_i32, %c0_i32_0 : i32, i32
  }
  func.func @transform_8(%arg0: i32) -> (i32, i32) {
    %c0_i32 = arith.constant 0 : i32
    %c0_i32_0 = arith.constant 0 : i32
    return %arg0, %c0_i32 : i32, i32
  }
}

</mosaic_0001>

<bundles_post_ra>
// kernel: _sbo_device.1
= control target key start
LH: loop header
LB: loop body
LE: loop exit
PB: predicated region body
PF: predicated region fallthrough
CT: control target
= control target key end

     0   :  { %s1042_s0 = inlined_call_operand.vmem [shape: bf16[32,128], index: 0, kind: input, shape index: {}]   ;;  %s1043_s1 = inlined_call_operand.vmem [shape: bf16[128,96], index: 1, kind: input, shape index: {}]   ;;  %s1044_s2 = inlined_call_operand.vmem [shape: bf16[96,64], index: 2, kind: input, shape index: {}]   ;;  %s1045_s3 = inlined_call_operand.vmem [shape: f32[3,64], index: 3, kind: input, shape index: {}]   ;;  %s1046_s4 = inlined_call_operand.vmem [shape: bf16[64,32], index: 4, kind: input, shape index: {}]   ;;  %s1047_s5 = inlined_call_operand.vmem [shape: f32[2,32], index: 5, kind: input, shape index: {}]   ;;  %s1048_s6 = inlined_call_operand.vmem [shape: bf16[32,128], index: 6, kind: input, shape index: {}]   ;;  %s1049_s7 = inlined_call_operand.vmem [shape: f32[1,128], index: 7, kind: input, shape index: {}]   ;;  %s1050_s8 = inlined_call_operand.hbm [shape: bf16[32,128], index: 8, kind: output, shape index: {}]  }
   0x1   :  { %v800_v0 = vld [vmem:[%s1043_s1] sm:$0xff]   ;;  %v801_v1 = vld [vmem:[%s1043_s1 + $0x8] sm:$0xff]   ;;  %v802_v2 = vld [vmem:[%s1043_s1 + $0x10] sm:$0xff]  }
   0x2   :  { %741 = vmatprep.subr.bf16.mxu0 %v800_v0  ;;  %v803_v3 = vld [vmem:[%s1043_s1 + $0x18] sm:$0xff]   ;;  %v808_v4 = vld [vmem:[%s1042_s0] sm:$0xff]   ;;  %v811_v6 = vld [vmem:[%s1044_s2 + $0x8] sm:$0xff]  }
   0x3   :  { %742 = vmatpush3.bf16.msra.mxu0 %v800_v0  ;;  %757 = vmatprep.mubr.bf16.mxu0 %v808_v4  ;;  %v810_v5 = vld [vmem:[%s1044_s2] sm:$0xff]   ;;  %v805_v8 = vld [vmem:[%s1043_s1 + $0x28] sm:$0xff]   ;;  %v812_v9 = vld [vmem:[%s1044_s2 + $0x10] sm:$0xff]  }
   0x4   :  { %743 = vmatprep.subr.bf16.mxu0 %v801_v1  ;;  %v804_v7 = vld [vmem:[%s1043_s1 + $0x20] sm:$0xff]   ;;  %761 = vmatprep.subr.bf16.mxu1 %v810_v5  ;;  %v813_v10 = vld [vmem:[%s1044_s2 + $0x18] sm:$0xff]  }
   0x5   :  { %762 = vmatpush3.bf16.msra.mxu1 %v810_v5 }
   0x6   :  { %763 = vmatprep.subr.bf16.mxu1 %v811_v6 }
   0x7   :  { %744 = vmatpush3.bf16.msra.mxu0 %v801_v1 }
   0x8   :  { %745 = vmatprep.subr.bf16.mxu0 %v802_v2 }
   0x9   :  { %764 = vmatpush3.bf16.msra.mxu1 %v811_v6 }
   0xa   :  { %765 = vmatprep.subr.bf16.mxu1 %v812_v9 }
   0xb   :  { %746 = vmatpush3.bf16.msra.mxu0 %v802_v2 }
   0xc   :  { %747 = vmatprep.subr.bf16.mxu0 %v803_v3 }
   0xf   :  { %748 = vmatpush3.bf16.msra.mxu0 %v803_v3 }
  0x10   :  { %749 = vmatprep.subr.bf16.mxu0 %v804_v7 }
  0x13   :  { %750 = vmatpush3.bf16.msra.mxu0 %v804_v7 }
  0x14   :  { %13 = vsyncpa [#allocation3], 0  ;;  %751 = vmatprep.subr.bf16.mxu0 %v805_v8  ;;  %v806_v11 = vld [vmem:[%s1043_s1 + $0x30] sm:$0xff]   ;;  %766 = vmatpush3.bf16.msra.mxu1 %v812_v9  ;;  %v814_v12 = vld [vmem:[%s1044_s2 + $0x20] sm:$0xff]   ;;  %vm219_vm0 = vcmask 785408   ;;  %vm295_vm1 = vcmask 523264  }
  0x15   :  { %767 = vmatprep.subr.bf16.mxu1 %v813_v10  ;;  %v807_v13 = vld [vmem:[%s1043_s1 + $0x38] sm:$0xff]   ;;  %v809_v14 = vld [vmem:[%s1042_s0 + $0x8] sm:$0xff]   ;;  %v670_v22 = vld [vmem:[%s1045_s3] ss:$0 sm:$0xff]  ;;  %vm474_vm2 = vcmask 261120  }
  0x16   :  { %v815_v15 = vld [vmem:[%s1044_s2 + $0x28] sm:$0xff]  }
  0x17   :  { %752 = vmatpush3.bf16.msra.mxu0 %v805_v8 }
  0x18   :  { %753 = vmatprep.subr.bf16.mxu0 %v806_v11  ;;  %768 = vmatpush3.bf16.msra.mxu1 %v813_v10 }
  0x19   :  { %769 = vmatprep.subr.bf16.mxu1 %v814_v12 }
  0x1b   :  { %754 = vmatpush3.bf16.msra.mxu0 %v806_v11  ;;  %v816_v11 = vld [vmem:[%s1046_s4] sm:$0xff]  }
  0x1c   :  { %755 = vmatprep.subr.bf16.mxu0 %v807_v13  ;;  %770 = vmatpush3.bf16.msra.mxu1 %v814_v12  ;;  %v817_v12 = vld [vmem:[%s1046_s4 + $0x8] sm:$0xff]  }
  0x1d   :  { %771 = vmatprep.subr.bf16.mxu1 %v815_v15 }
  0x1f   :  { %756 = vmatpush3.bf16.msra.mxu0 %v807_v13  ;;  %v818_v13 = vld [vmem:[%s1046_s4 + $0x10] sm:$0xff]  }
  0x20   :  { %772 = vmatpush3.bf16.msra.mxu1 %v815_v15 }
  0x21   :  { %777 = vmatprep.subr.bf16.mxu1 %v816_v11 }
  0x22   :  { %758 = vmatmul.mubr.bf16.vlgmr.msra.gmra.mrb[0].mxu0 %v809_v14  ;;  %v819_v14 = vld [vmem:[%s1046_s4 + $0x18] sm:$0xff]  }
  0xf5   :  { %v759_v16 = vpop.f32.mrb[0].mxu0 }
  0xf6   :  { %v150_v17 = vpop.f32.mrb[1].mxu0 }
  0xf7   :  { %v760_v18 = vpop.f32.mrb[2].mxu0 }
  0xf8   :  { %v166_v19 = vpack.c.bf16 %v760_v18, %v759_v16  ;;  %v153_v20 = vpop.f32.mrb[3].mxu0 }
  0xf9   :  { %v165_v21 = vpack.c.bf16 %v153_v20, %v150_v17 }
  0xfb   :  { %773 = vmatprep.mubr.msk.bf16.mxu1 %vm219_vm0, %v165_v21 }
  0xfc   :  { %774 = vmatmul.mubr.msk.bf16.vlgmr.msra.gmra.mrb[0].mxu1 %vm219_vm0, %v166_v19 }
  0xfd   :  { %778 = vmatpush3.bf16.msra.mxu1 %v816_v11 }
  0xfe   :  { %779 = vmatprep.subr.bf16.mxu1 %v817_v12 }
 0x101   :  { %780 = vmatpush3.bf16.msra.mxu1 %v817_v12 }
 0x102   :  { %781 = vmatprep.subr.bf16.mxu1 %v818_v13 }
 0x105   :  { %782 = vmatpush3.bf16.msra.mxu1 %v818_v13 }
 0x106   :  { %783 = vmatprep.subr.bf16.mxu1 %v819_v14 }
 0x109   :  { %784 = vmatpush3.bf16.msra.mxu1 %v819_v14 }
 0x1cf   :  { %v775_v23 = vpop.f32.mrb[0].mxu1 }
 0x1d0   :  { %v269_v24 = vadd.f32 %v775_v23, %v670_v22  ;;  %v260_v25 = vpop.f32.mrb[1].mxu1 }
 0x1d1   :  { %v261_v26 = vadd.f32 %v670_v22, %v260_v25  ;;  %v776_v27 = vpop.f32.mrb[2].mxu1 }
 0x1d2   :  { %v281_v28 = vmul.f32 0.70710677, %v269_v24  ;;  %v272_v29 = vadd.f32 %v776_v27, %v670_v22  ;;  %v263_v30 = vpop.f32.mrb[3].mxu1  ;;  %v277_v37 = vmul.f32 0.5, %v269_v24 }
 0x1d3   :  { %v279_v31 = vmul.f32 0.70710677, %v261_v26  ;;  %v264_v32 = vadd.f32 %v670_v22, %v263_v30  ;;  %v275_v40 = vmul.f32 0.5, %v261_v26 }
 0x1d4   :  { %822 = verf.f32 %v281_v28  ;;  %v282_v33 = vmul.f32 0.70710677, %v272_v29  ;;  %v278_v43 = vmul.f32 0.5, %v272_v29  ;;  %v679_v29 = vld [vmem:[%s1045_s3 + $0x1] ss:$0 sm:$0xff] }
 0x1d5   :  { %824 = verf.f32 %v279_v31  ;;  %v280_v34 = vmul.f32 0.70710677, %v264_v32  ;;  %v276_v46 = vmul.f32 0.5, %v264_v32 }
 0x1d6   :  { %826 = verf.f32 %v282_v33 }
 0x1d7   :  { %828 = verf.f32 %v280_v34 }
 0x1de   :  { %v823_v35 = vpop.eup %822 }
 0x1df   :  { %v825_v36 = vpop.eup %824  ;;  %v289_v38 = vadd.f32 1.0, %v823_v35  ;;  %v680_v35 = vld [vmem:[%s1045_s3 + $0x2] ss:$0 sm:$0xff] }
 0x1e0   :  { %v827_v39 = vpop.eup %826  ;;  %v287_v41 = vadd.f32 1.0, %v825_v36 }
 0x1e1   :  { %v829_v42 = vpop.eup %828  ;;  %v293_v44 = vmul.f32 %v289_v38, %v277_v37  ;;  %v290_v45 = vadd.f32 1.0, %v827_v39 }
 0x1e2   :  { %v291_v47 = vmul.f32 %v287_v41, %v275_v40  ;;  %v288_v48 = vadd.f32 1.0, %v829_v42 }
 0x1e3   :  { %v302_v49 = vsel %vm295_vm1, %v293_v44, 0.0  ;;  %v294_v50 = vmul.f32 %v290_v45, %v278_v43 }
 0x1e4   :  { %303 = vadd.xlane.f32.xlu1 %v302_v49  ;;  %v296_v51 = vsel %vm295_vm1, %v291_v47, 0.0  ;;  %v292_v52 = vmul.f32 %v288_v48, %v276_v46 }
 0x1e5   :  { %297 = vadd.xlane.f32.xlu0 %v296_v51  ;;  %v305_v53 = vsel %vm295_vm1, %v294_v50, 0.0 }
 0x1e6   :  { %v299_v54 = vsel %vm295_vm1, %v292_v52, 0.0 }
 0x1e8   :  { %306 = vadd.xlane.f32.xlu1 %v305_v53 }
 0x1e9   :  { %300 = vadd.xlane.f32.xlu0 %v299_v54 }
 0x271   :  { %v304_v55 = vpop.xlane.xlu1 %303 }
 0x272   :  { %v311_v56 = vmul.f32 0.015625, %v304_v55  ;;  %v298_v57 = vpop.xlane.xlu0 %297 }
 0x273   :  { %v309_v58 = vmul.f32 0.015625, %v298_v57 }
 0x274   :  { %v315_v59 = vsub.f32 %v293_v44, %v311_v56 }
 0x275   :  { %v313_v60 = vsub.f32 %v291_v47, %v309_v58  ;;  %v307_v61 = vpop.xlane.xlu1 %306 }
 0x276   :  { %v312_v62 = vmul.f32 0.015625, %v307_v61  ;;  %v301_v63 = vpop.xlane.xlu0 %300  ;;  %v319_v5 = vmul.f32 %v315_v59, %v315_v59 }
 0x277   :  { %v310_v0 = vmul.f32 0.015625, %v301_v63  ;;  %v317_v1 = vmul.f32 %v313_v60, %v313_v60 }
 0x278   :  { %v316_v2 = vsub.f32 %v294_v50, %v312_v62  ;;  %v327_v7 = vsel %vm295_vm1, %v319_v5, 0.0 }
 0x279   :  { %v314_v3 = vsub.f32 %v292_v52, %v310_v0  ;;  %v321_v4 = vsel %vm295_vm1, %v317_v1, 0.0 }
 0x27a   :  { %322 = vadd.xlane.f32.xlu0 %v321_v4  ;;  %v320_v9 = vmul.f32 %v316_v2, %v316_v2 }
 0x27b   :  { %v318_v6 = vmul.f32 %v314_v3, %v314_v3 }
 0x27c   :  { %v330_v10 = vsel %vm295_vm1, %v320_v9, 0.0 }
 0x27d   :  { %v324_v8 = vsel %vm295_vm1, %v318_v6, 0.0 }
 0x27e   :  { %328 = vadd.xlane.f32.xlu0 %v327_v7  ;;  %325 = vadd.xlane.f32.xlu1 %v324_v8 }
 0x282   :  { %331 = vadd.xlane.f32.xlu1 %v330_v10 }
 0x307   :  { %v323_v15 = vpop.xlane.xlu0 %322 }
 0x308   :  { %v333_v16 = vmul.f32 0.015625, %v323_v15 }
 0x30a   :  { %v337_v17 = vadd.f32 1e-05, %v333_v16 }
 0x30b   :  { %v326_v18 = vpop.xlane.xlu1 %325  ;;  %v329_v19 = vpop.xlane.xlu0 %328 }
 0x30c   :  { %830 = vrsqrt.f32 %v337_v17  ;;  %v334_v20 = vmul.f32 0.015625, %v326_v18  ;;  %v335_v21 = vmul.f32 0.015625, %v329_v19 }
 0x30e   :  { %v338_v22 = vadd.f32 1e-05, %v334_v20  ;;  %v339_v23 = vadd.f32 1e-05, %v335_v21 }
 0x30f   :  { %v332_v24 = vpop.xlane.xlu1 %331 }
 0x310   :  { %832 = vrsqrt.f32 %v338_v22  ;;  %v336_v25 = vmul.f32 0.015625, %v332_v24 }
 0x311   :  { %834 = vrsqrt.f32 %v339_v23 }
 0x312   :  { %v340_v26 = vadd.f32 1e-05, %v336_v25 }
 0x314   :  { %836 = vrsqrt.f32 %v340_v26 }
 0x316   :  { %v831_v27 = vpop.eup %830 }
 0x317   :  { %v345_v28 = vmul.f32 %v831_v27, %v313_v60 }
 0x319   :  { %v353_v33 = vmul.f32 %v679_v29, %v345_v28 }
 0x31a   :  { %v833_v30 = vpop.eup %832 }
 0x31b   :  { %v835_v31 = vpop.eup %834  ;;  %v346_v32 = vmul.f32 %v833_v30, %v314_v3  ;;  %v361_v40 = vadd.f32 %v680_v35, %v353_v33 }
 0x31c   :  { %v347_v34 = vmul.f32 %v835_v31, %v315_v59  ;;  %v820_v31 = vld [vmem:[%s1048_s6] sm:$0xff]  }
 0x31d   :  { %v354_v36 = vmul.f32 %v679_v29, %v346_v32  ;;  %789 = vmatprep.subr.bf16.mxu0 %v820_v31  ;;  %v821_v32 = vld [vmem:[%s1048_s6 + $0x8] sm:$0xff]  }
 0x31e   :  { %v837_v37 = vpop.eup %836  ;;  %v355_v38 = vmul.f32 %v679_v29, %v347_v34  ;;  %790 = vmatpush3.bf16.msra.mxu0 %v820_v31 }
 0x31f   :  { %v348_v39 = vmul.f32 %v837_v37, %v316_v2  ;;  %v362_v41 = vadd.f32 %v680_v35, %v354_v36  ;;  %791 = vmatprep.subr.bf16.mxu0 %v821_v32 }
 0x320   :  { %v363_v44 = vadd.f32 %v680_v35, %v355_v38 }
 0x321   :  { %v356_v42 = vmul.f32 %v679_v29, %v348_v39  ;;  %v365_v43 = vpack.c.bf16 %v362_v41, %v361_v40 }
 0x322   :  { %792 = vmatpush3.bf16.msra.mxu0 %v821_v32 }
 0x323   :  { %785 = vmatprep.mubr.msk.bf16.mxu1 %vm295_vm1, %v365_v43  ;;  %v364_v45 = vadd.f32 %v680_v35, %v356_v42 }
 0x325   :  { %v366_v46 = vpack.c.bf16 %v364_v45, %v363_v44 }
 0x327   :  { %786 = vmatmul.mubr.msk.bf16.vlgmr.msra.gmra.mrb[4].mxu1 %vm295_vm1, %v366_v46  ;;  %v687_v46 = vld [vmem:[%s1047_s5] ss:$0 sm:$0xff] }
 0x3fa   :  { %v787_v47 = vpop.f32.mrb[4].mxu1 }
 0x3fb   :  { %v460_v48 = vmul.f32 0.70710677, %v787_v47  ;;  %v439_v49 = vpop.f32.mrb[5].mxu1  ;;  %v456_v62 = vmul.f32 0.5, %v787_v47 }
 0x3fc   :  { %v458_v50 = vmul.f32 0.70710677, %v439_v49  ;;  %v788_v51 = vpop.f32.mrb[6].mxu1  ;;  %v454_v58 = vmul.f32 0.5, %v439_v49 }
 0x3fd   :  { %838 = verf.f32 %v460_v48  ;;  %v461_v52 = vmul.f32 0.70710677, %v788_v51  ;;  %v442_v53 = vpop.f32.mrb[7].mxu1  ;;  %v457_v3 = vmul.f32 0.5, %v788_v51 }
 0x3fe   :  { %840 = verf.f32 %v458_v50  ;;  %v459_v54 = vmul.f32 0.70710677, %v442_v53  ;;  %v455_v63 = vmul.f32 0.5, %v442_v53 }
 0x3ff   :  { %842 = verf.f32 %v461_v52  ;;  %v688_v52 = vld [vmem:[%s1047_s5 + $0x1] ss:$0 sm:$0xff]  ;;  %s878_s5 = smov [#allocation2]  }
 0x400   :  { %844 = verf.f32 %v459_v54  ;;  %s649_s11 = sshll.u32 %s878_s5, 4  ;;  %s650_s11 = int_to_ptr.vmem [resolvable:$true] %s649_s11 }
 0x401   :  { %s854_s12 = scalar_lea.vmem %s650_s11, 256  ;;  %p859_p1 = scmp.lt.s32.totalorder %s650_s11, %s650_s11 }
 0x402   :  { %p855_p0 = scmp.ne.s32.totalorder %s650_s11, %s854_s12  ;;  %p860_p2 = scmp.lt.s32.totalorder %s854_s12, %s854_s12 }
 0x404   :  { %p861_p3 = por %p860_p2, %p859_p1 }
 0x406   :  { %p862_p4 = pnand %p861_p3, %p855_p0 }
 0x407   :  { %v839_v55 = vpop.eup %838 }
 0x408   :  { %v841_v56 = vpop.eup %840  ;;  %v468_v60 = vadd.f32 1.0, %v839_v55 }
 0x409   :  { %v843_v57 = vpop.eup %842  ;;  %v466_v59 = vadd.f32 1.0, %v841_v56 }
 0x40a   :  { %v845_v61 = vpop.eup %844  ;;  %v469_v2 = vadd.f32 1.0, %v843_v57  ;;  %v472_v6 = vmul.f32 %v468_v60, %v456_v62 }
 0x40b   :  { %v467_v0 = vadd.f32 1.0, %v845_v61  ;;  %v470_v1 = vmul.f32 %v466_v59, %v454_v58 }
 0x40c   :  { %v473_v8 = vmul.f32 %v469_v2, %v457_v3  ;;  %v481_v9 = vsel %vm474_vm2, %v472_v6, 0.0  ;;  %v689_v2 = vld [vmem:[%s1049_s7] ss:$0 sm:$0xff] }
 0x40d   :  { %v475_v4 = vsel %vm474_vm2, %v470_v1, 0.0  ;;  %v471_v5 = vmul.f32 %v467_v0, %v455_v63 }
 0x40e   :  { %476 = vadd.xlane.f32.xlu0 %v475_v4  ;;  %v484_v10 = vsel %vm474_vm2, %v473_v8, 0.0 }
 0x40f   :  { %v478_v7 = vsel %vm474_vm2, %v471_v5, 0.0 }
 0x410   :  { %479 = vadd.xlane.f32.xlu1 %v478_v7 }
 0x412   :  { %482 = vadd.xlane.f32.xlu0 %v481_v9 }
 0x414   :  { %485 = vadd.xlane.f32.xlu1 %v484_v10 }
 0x49b   :  { %v477_v11 = vpop.xlane.xlu0 %476 }
 0x49c   :  { %v488_v12 = vmul.f32 0.03125, %v477_v11 }
 0x49d   :  { %v480_v13 = vpop.xlane.xlu1 %479 }
 0x49e   :  { %v492_v14 = vsub.f32 %v470_v1, %v488_v12  ;;  %v489_v15 = vmul.f32 0.03125, %v480_v13 }
 0x49f   :  { %v483_v16 = vpop.xlane.xlu0 %482 }
 0x4a0   :  { %v493_v17 = vsub.f32 %v471_v5, %v489_v15  ;;  %v490_v18 = vmul.f32 0.03125, %v483_v16  ;;  %v496_v19 = vmul.f32 %v492_v14, %v492_v14 }
 0x4a1   :  { %v486_v20 = vpop.xlane.xlu1 %485 }
 0x4a2   :  { %v494_v21 = vsub.f32 %v472_v6, %v490_v18  ;;  %v491_v22 = vmul.f32 0.03125, %v486_v20  ;;  %v500_v23 = vsel %vm474_vm2, %v496_v19, 0.0  ;;  %v497_v24 = vmul.f32 %v493_v17, %v493_v17 }
 0x4a3   :  { %501 = vadd.xlane.f32.xlu0 %v500_v23 }
 0x4a4   :  { %v495_v25 = vsub.f32 %v473_v8, %v491_v22  ;;  %v503_v26 = vsel %vm474_vm2, %v497_v24, 0.0  ;;  %v498_v27 = vmul.f32 %v494_v21, %v494_v21 }
 0x4a5   :  { %504 = vadd.xlane.f32.xlu1 %v503_v26 }
 0x4a6   :  { %v506_v28 = vsel %vm474_vm2, %v498_v27, 0.0  ;;  %v499_v29 = vmul.f32 %v495_v25, %v495_v25 }
 0x4a7   :  { %507 = vadd.xlane.f32.xlu0 %v506_v28 }
 0x4a8   :  { %v509_v30 = vsel %vm474_vm2, %v499_v29, 0.0 }
 0x4a9   :  { %510 = vadd.xlane.f32.xlu1 %v509_v30 }
 0x530   :  { %v502_v33 = vpop.xlane.xlu0 %501 }
 0x531   :  { %v512_v34 = vmul.f32 0.03125, %v502_v33 }
 0x532   :  { %v505_v35 = vpop.xlane.xlu1 %504 }
 0x533   :  { %v516_v36 = vadd.f32 1e-05, %v512_v34  ;;  %v513_v37 = vmul.f32 0.03125, %v505_v35 }
 0x534   :  { %v508_v38 = vpop.xlane.xlu0 %507 }
 0x535   :  { %846 = vrsqrt.f32 %v516_v36  ;;  %v517_v39 = vadd.f32 1e-05, %v513_v37  ;;  %v514_v40 = vmul.f32 0.03125, %v508_v38 }
 0x536   :  { %v511_v41 = vpop.xlane.xlu1 %510 }
 0x537   :  { %848 = vrsqrt.f32 %v517_v39  ;;  %v518_v42 = vadd.f32 1e-05, %v514_v40  ;;  %v515_v43 = vmul.f32 0.03125, %v511_v41 }
 0x539   :  { %850 = vrsqrt.f32 %v518_v42  ;;  %v519_v44 = vadd.f32 1e-05, %v515_v43 }
 0x53b   :  { %852 = vrsqrt.f32 %v519_v44 }
 0x53f   :  { %v847_v45 = vpop.eup %846 }
 0x540   :  { %v524_v47 = vmul.f32 %v847_v45, %v492_v14 }
 0x541   :  { %v849_v48 = vpop.eup %848 }
 0x542   :  { %v525_v49 = vmul.f32 %v849_v48, %v493_v17  ;;  %v532_v50 = vmul.f32 %v687_v46, %v524_v47 }
 0x543   :  { %v851_v51 = vpop.eup %850 }
 0x544   :  { %v526_v53 = vmul.f32 %v851_v51, %v494_v21  ;;  %v533_v54 = vmul.f32 %v687_v46, %v525_v49  ;;  %v540_v58 = vadd.f32 %v688_v52, %v532_v50 }
 0x545   :  { %v853_v55 = vpop.eup %852 }
 0x546   :  { %v534_v56 = vmul.f32 %v687_v46, %v526_v53  ;;  %v527_v57 = vmul.f32 %v853_v55, %v495_v25  ;;  %v541_v59 = vadd.f32 %v688_v52, %v533_v54 }
 0x548   :  { %v535_v60 = vmul.f32 %v687_v46, %v527_v57  ;;  %v544_v61 = vpack.c.bf16 %v541_v59, %v540_v58  ;;  %v542_v62 = vadd.f32 %v688_v52, %v534_v56 }
 0x54a   :  { %793 = vmatprep.mubr.msk.bf16.mxu0 %vm474_vm2, %v544_v61  ;;  %v543_v63 = vadd.f32 %v688_v52, %v535_v60 }
 0x54c   :  { %v545_v0 = vpack.c.bf16 %v543_v63, %v542_v62 }
 0x54e   :  { %794 = vmatmul.mubr.msk.bf16.vlgmr.msra.gmra.mrb[4].mxu0 %vm474_vm2, %v545_v0 }
 0x621   :  { %v795_v1 = vpop.f32.mrb[4].mxu0 }
 0x622   :  { %v609_v3 = vpop.f32.mrb[5].mxu0  ;;  %v618_v5 = vadd.f32 %v795_v1, %v689_v2 }
 0x623   :  { %v796_v4 = vpop.f32.mrb[6].mxu0  ;;  %v610_v8 = vadd.f32 %v689_v2, %v609_v3 }
 0x624   :  { %v621_v6 = vadd.f32 %v796_v4, %v689_v2  ;;  %v612_v7 = vpop.f32.mrb[7].mxu0 }
 0x625   :  { %v613_v9 = vadd.f32 %v689_v2, %v612_v7 }
 0x626   :  { %v710_v10 = vpack.c.bf16 %v621_v6, %v618_v5 }
 0x627   :  { %v705_v11 = vpack.c.bf16 %v613_v9, %v610_v8 }
 0x628   :  { %712 = vst [vmem:[#allocation2 + $0x8] sm:$0xff] %v710_v10  }
 0x629   :  { %706 = vst [vmem:[#allocation2] sm:$0xff] %v705_v11  }
 0x62a   :  { %865 = shalt.err (!%p862_p4)
}
 0x62b   :  { %s866_s14 = scalar_lea.hbm %s1050_s8, 256 }
 0x62c   :  { %p867_p5 = scmp.ne.s32.totalorder %s1050_s8, %s866_s14  ;;  %p870_p6 = scmp.lt.u32.totalorder %s866_s14, %s1050_s8 }
 0x62e   :  { %p872_p7 = pnand %p870_p6, %p867_p5 }
 0x630   :  { %875 = shalt.err (!%p872_p7)
}
 0x631   :  { %s879_s16 = smov 64   ;;  %s880_s17 = smov 4  }
 0x632   :  { %655 = dma.vmem_to_hbm [thread:$0]  %s650_s11, 256, %s1050_s8, [#allocation3], %s879_s16, %s879_s16, %s880_s17  }
 0x633   :  { %876 = dma.done.wait [#allocation3], 256  }
 0x634   :  { %877 = vsyncadd [#allocation3], 4294967040 }
 0x635   :  { %659 = vsyncpa [#allocation3], 1 }

</bundles_post_ra>
